<compile_context>
chip_gen: v7x
topology: tpu7x:2x2x1
jax: 0.10.0
libtpu: 0.0.40
codegen_flags: <defaults>
</compile_context>

<pallas_src>
import functools

import jax
import jax.numpy as jnp
from jax.experimental import pallas as pl
from jax.experimental.pallas import tpu as pltpu


def _round_up(n, m):
    return (n + m - 1) // m * m


def _fc_net_kernel(x_ref, w1_ref, b1_ref, w2_ref, b2_ref, o_ref):
    # Whole (padded) problem is a single VMEM tile; the entire hot path
    # (2 matmuls + relu + log_softmax) lives in one gridless kernel body.
    # x / w1 / w2 arrive already in the MXU feed dtype (bf16 by default);
    # accumulation and all elementwise math are f32.
    h = jnp.dot(x_ref[...], w1_ref[...],
                preferred_element_type=jnp.float32)          # (Bp, Hp) f32
    h = jnp.maximum(h + b1_ref[...], 0.0)

    logits = jnp.dot(h.astype(w2_ref.dtype), w2_ref[...],
                     preferred_element_type=jnp.float32)     # (Bp, Cp) f32
    # b2's padded class lanes hold -1e30, so the class mask is free here.
    logits = logits + b2_ref[...]

    # dropout: identity (eval mode)

    # Numerically-stable log_softmax over the class axis (PyTorch dim=1).
    m = jnp.max(logits, axis=-1, keepdims=True)
    shifted = logits - m
    lse = jnp.log(jnp.sum(jnp.exp(shifted), axis=-1, keepdims=True))
    o_ref[...] = (shifted - lse).astype(o_ref.dtype)


def prepare_params(w1, b1, w2, b2, *, matmul_dtype=jnp.bfloat16):
    """One-time: pad weights lane-dense (128) and cast them to the MXU feed
    dtype; biases stay f32, with b2's padded class lanes set to -1e30 so the
    log_softmax mask is baked into the constant.

    w1: (D, H); b1: (1, H); w2: (H, C); b2: (1, C)  (stored (in, out),
    i.e. pre-transposed relative to PyTorch's (out, in)).
    """
    D, H = w1.shape
    C = w2.shape[1]
    Dp = _round_up(D, 128)
    Hp = _round_up(H, 128)
    Cp = _round_up(C, 128)

    w1p = jnp.pad(w1, ((0, Dp - D), (0, Hp - H))).astype(matmul_dtype)
    w2p = jnp.pad(w2, ((0, Hp - H), (0, Cp - C))).astype(matmul_dtype)
    b1p = jnp.pad(b1, ((0, 0), (0, Hp - H))).astype(jnp.float32)
    b2p = jnp.pad(b2, ((0, 0), (0, Cp - C))).astype(jnp.float32)
    # Bake the class mask: padded class lanes -> -1e30 (safe: logits stay f32).
    col = jnp.arange(Cp)[None, :]
    b2p = jnp.where(col < C, b2p, jnp.float32(-1e30))
    return w1p, b1p, w2p, b2p


@functools.partial(jax.jit, static_argnames=("num_classes",))
def fc_neural_net_forward(x, w1p, b1p, w2p, b2p, *, num_classes):
    """x: (B, D) f32; padded params from prepare_params().
    Returns (B, num_classes) f32 log-probabilities."""
    B, D = x.shape
    Dp, Hp = w1p.shape
    Cp = w2p.shape[1]
    Bp = _round_up(B, 8)

    # Only per-call data prep left: pad x to the padded tile and cast to the
    # MXU feed dtype.  Under jit this fuses with the pallas_call dispatch.
    xp = jnp.pad(x, ((0, Bp - B), (0, Dp - D))).astype(w1p.dtype)

    vmem = pl.BlockSpec(memory_space=pltpu.MemorySpace.VMEM)
    out_padded = pl.pallas_call(
        _fc_net_kernel,
        out_shape=jax.ShapeDtypeStruct((Bp, Cp), jnp.float32),
        in_specs=[vmem, vmem, vmem, vmem, vmem],
        out_specs=vmem,
    )(xp, w1p, b1p, w2p, b2p)

    return out_padded[:B, :num_classes]


def init_params(key, input_dim, hidden_dim, num_classes):
    """Deterministic init mimicking nn.Linear's U(-1/sqrt(fan_in), 1/sqrt(fan_in))."""
    k1, k2, k3, k4 = jax.random.split(key, 4)
    bound1 = 1.0 / jnp.sqrt(input_dim)
    bound2 = 1.0 / jnp.sqrt(hidden_dim)
    # stored transposed relative to PyTorch's (out, in) -> (in, out)
    w1 = jax.random.uniform(k1, (input_dim, hidden_dim), jnp.float32, -bound1, bound1)
    b1 = jax.random.uniform(k2, (1, hidden_dim), jnp.float32, -bound1, bound1)
    w2 = jax.random.uniform(k3, (hidden_dim, num_classes), jnp.float32, -bound2, bound2)
    b2 = jax.random.uniform(k4, (1, num_classes), jnp.float32, -bound2, bound2)
    return w1, b1, w2, b2


if __name__ == "__main__":
    batch, input_dim, hidden_dim, num_classes = 8, 32, 32, 16

    key = jax.random.PRNGKey(0)
    kx, kp = jax.random.split(key)
    x = jax.random.normal(kx, (batch, input_dim), jnp.float32)
    w1, b1, w2, b2 = init_params(kp, input_dim, hidden_dim, num_classes)

    # One-time param prep (padding + bf16 cast hoisted out of the call path).
    w1p, b1p, w2p, b2p = prepare_params(w1, b1, w2, b2)

    out = fc_neural_net_forward(x, w1p, b1p, w2p, b2p, num_classes=num_classes)
    out = jax.block_until_ready(out)

    # Sanity check against a pure-JAX reference using the same bf16 MXU feed
    # (f32 accumulation), so the comparison tolerance can stay tight.
    bf = jnp.bfloat16
    h_ref = jnp.maximum(
        jnp.dot(x.astype(bf), w1.astype(bf), preferred_element_type=jnp.float32) + b1,
        0.0)
    logits_ref = jnp.dot(h_ref.astype(bf), w2.astype(bf),
                         preferred_element_type=jnp.float32) + b2
    ref = jax.nn.log_softmax(logits_ref, axis=1)

    assert out.shape == (batch, num_classes)
    assert jnp.allclose(out, ref, atol=1e-3, rtol=1e-3), (
        float(jnp.max(jnp.abs(out - ref))))

    print("KERNEL_OK")
</pallas_src>

<mosaic_0001>
module attributes {stable_mosaic.version = 11 : i64} {
  func.func @_fc_net_kernel(%arg0: memref<8x128xbf16, #tpu.memory_space<vmem>>, %arg1: memref<128x128xbf16, #tpu.memory_space<vmem>>, %arg2: memref<1x128xf32, #tpu.memory_space<vmem>>, %arg3: memref<128x128xbf16, #tpu.memory_space<vmem>>, %arg4: memref<1x128xf32, #tpu.memory_space<vmem>>, %arg5: memref<8x128xf32, #tpu.memory_space<vmem>>) attributes {dimension_semantics = [], scalar_prefetch = 0 : i64, scratch_operands = 0 : i64, tpu.core_type = #tpu.core_type<tc>} {
    %c0 = arith.constant 0 : index
    %c0_0 = arith.constant 0 : index
    %0 = vector.load %arg0[%c0, %c0_0] : memref<8x128xbf16, #tpu.memory_space<vmem>>, vector<8x128xbf16>
    %c0_1 = arith.constant 0 : index
    %c0_2 = arith.constant 0 : index
    %1 = vector.load %arg1[%c0_1, %c0_2] : memref<128x128xbf16, #tpu.memory_space<vmem>>, vector<128x128xbf16>
    %cst = arith.constant dense<0.000000e+00> : vector<8x128xf32>
    %2 = tpu.matmul %0, %1, %cst {dimension_numbers = #tpu.dot_dimension_numbers<[1], [0], [0], [1], [0, 0, 1, 1], [], []>} : vector<8x128xbf16>, vector<128x128xbf16>, vector<8x128xf32> -> vector<8x128xf32>
    %c0_3 = arith.constant 0 : index
    %c0_4 = arith.constant 0 : index
    %3 = vector.load %arg2[%c0_3, %c0_4] : memref<1x128xf32, #tpu.memory_space<vmem>>, vector<1x128xf32>
    %4 = vector.broadcast %3 : vector<1x128xf32> to vector<8x128xf32>
    %5 = arith.addf %2, %4 : vector<8x128xf32>
    %cst_5 = arith.constant 0.000000e+00 : f32
    %6 = vector.broadcast %cst_5 : f32 to vector<8x128xf32>
    %7 = arith.maximumf %5, %6 : vector<8x128xf32>
    %8 = arith.truncf %7 : vector<8x128xf32> to vector<8x128xbf16>
    %c0_6 = arith.constant 0 : index
    %c0_7 = arith.constant 0 : index
    %9 = vector.load %arg3[%c0_6, %c0_7] : memref<128x128xbf16, #tpu.memory_space<vmem>>, vector<128x128xbf16>
    %cst_8 = arith.constant dense<0.000000e+00> : vector<8x128xf32>
    %10 = tpu.matmul %8, %9, %cst_8 {dimension_numbers = #tpu.dot_dimension_numbers<[1], [0], [0], [1], [0, 0, 1, 1], [], []>} : vector<8x128xbf16>, vector<128x128xbf16>, vector<8x128xf32> -> vector<8x128xf32>
    %c0_9 = arith.constant 0 : index
    %c0_10 = arith.constant 0 : index
    %11 = vector.load %arg4[%c0_9, %c0_10] : memref<1x128xf32, #tpu.memory_space<vmem>>, vector<1x128xf32>
    %12 = vector.broadcast %11 : vector<1x128xf32> to vector<8x128xf32>
    %13 = arith.addf %10, %12 : vector<8x128xf32>
    %cst_11 = arith.constant dense<0xFF800000> : vector<8xf32>
    %14 = vector.multi_reduction <maximumf>, %13, %cst_11 [1] : vector<8x128xf32> to vector<8xf32>
    %15 = vector.shape_cast %14 : vector<8xf32> to vector<8x1xf32>
    %16 = vector.broadcast %15 : vector<8x1xf32> to vector<8x128xf32>
    %17 = arith.subf %13, %16 : vector<8x128xf32>
    %18 = math.exp %17 : vector<8x128xf32>
    %cst_12 = arith.constant dense<0.000000e+00> : vector<8xf32>
    %19 = vector.multi_reduction <add>, %18, %cst_12 [1] : vector<8x128xf32> to vector<8xf32>
    %20 = vector.shape_cast %19 : vector<8xf32> to vector<8x1xf32>
    %21 = math.log %20 : vector<8x1xf32>
    %22 = vector.broadcast %21 : vector<8x1xf32> to vector<8x128xf32>
    %23 = arith.subf %17, %22 : vector<8x128xf32>
    %c0_13 = arith.constant 0 : index
    %c0_14 = arith.constant 0 : index
    %24 = vector.load %arg5[%c0_13, %c0_14] : memref<8x128xf32, #tpu.memory_space<vmem>>, vector<8x128xf32>
    tpu.vector_store %arg5[%c0_13, %c0_14], %23 {strides = array<i32>} : memref<8x128xf32, #tpu.memory_space<vmem>>, vector<8x128xf32>,
    return
  }
}

</mosaic_0001>

<bundles_post_ra>
// kernel: fc_neural_net_forward.1
= control target key start
LH: loop header
LB: loop body
LE: loop exit
PB: predicated region body
PF: predicated region fallthrough
CT: control target
= control target key end

     0   :  { %10 = vsyncpa [#allocation3], 0  ;;  %s559_s0 = inlined_call_operand.vmem [shape: bf16[8,128], index: 0, kind: input, shape index: {}]   ;;  %s560_s1 = inlined_call_operand.hbm [shape: bf16[128,128], index: 1, kind: input, shape index: {}]   ;;  %s561_s2 = inlined_call_operand.vmem [shape: f32[1,128], index: 2, kind: input, shape index: {}]   ;;  %s562_s3 = inlined_call_operand.hbm [shape: bf16[128,128], index: 3, kind: input, shape index: {}]   ;;  %s563_s4 = inlined_call_operand.vmem [shape: f32[1,128], index: 4, kind: input, shape index: {}]   ;;  %s564_s5 = inlined_call_operand.hbm [shape: f32[8,128], index: 5, kind: output, shape index: {}]  }
   0x1   :  { %11 = vsyncpa [#allocation6], 0 }
   0x2   :  { %12 = vsyncpa [#allocation4], 0  ;;  %s477_s18 = smov [#allocation2]   ;;  %s405_s22 = scalar_lea.hbm %s560_s1, 1024 }
   0x3   :  { %s20_s19 = sshll.u32 %s477_s18, 4  ;;  %p406_p0 = scmp.ne.s32.totalorder %s560_s1, %s405_s22  ;;  %s21_s19 = int_to_ptr.vmem [resolvable:$true] %s20_s19 }
   0x4   :  { %p409_p1 = scmp.lt.u32.totalorder %s405_s22, %s560_s1 }
   0x6   :  { %p411_p2 = pnand %p409_p1, %p406_p0 }
   0x8   :  { %414 = shalt.err (!%p411_p2)
}
   0x9   :  { %s415_s27 = scalar_lea.vmem %s21_s19, 1024  ;;  %p420_p4 = scmp.lt.s32.totalorder %s21_s19, %s21_s19 }
   0xa   :  { %p416_p3 = scmp.ne.s32.totalorder %s21_s19, %s415_s27  ;;  %p421_p5 = scmp.lt.s32.totalorder %s415_s27, %s415_s27 }
   0xc   :  { %p422_p6 = por %p421_p5, %p420_p4 }
   0xe   :  { %p423_p7 = pnand %p422_p6, %p416_p3 }
  0x10   :  { %426 = shalt.err (!%p423_p7)
}
  0x11   :  { %s478_s28 = smov 64   ;;  %s479_s29 = smov 4  }
  0x12   :  { %26 = dma.hbm_to_vmem [thread:$0]  %s560_s1, 1024, %s21_s19, [#allocation3], %s478_s28, %s478_s28, %s479_s29  }
  0x13   :  { %s480_s7 = smov [#allocation5]   ;;  %s427_s11 = scalar_lea.hbm %s562_s3, 1024 }
  0x14   :  { %s34_s8 = sshll.u32 %s480_s7, 4  ;;  %p428_p8 = scmp.ne.s32.totalorder %s562_s3, %s427_s11  ;;  %s35_s8 = int_to_ptr.vmem [resolvable:$true] %s34_s8 }
  0x15   :  { %p431_p9 = scmp.lt.u32.totalorder %s427_s11, %s562_s3 }
  0x17   :  { %p433_p10 = pnand %p431_p9, %p428_p8 }
  0x19   :  { %436 = shalt.err (!%p433_p10)
}
  0x1a   :  { %s437_s16 = scalar_lea.vmem %s35_s8, 1024  ;;  %p442_p12 = scmp.lt.s32.totalorder %s35_s8, %s35_s8 }
  0x1b   :  { %p438_p11 = scmp.ne.s32.totalorder %s35_s8, %s437_s16  ;;  %p443_p13 = scmp.lt.s32.totalorder %s437_s16, %s437_s16 }
  0x1d   :  { %p444_p0 = por %p443_p13, %p442_p12 }
  0x1f   :  { %p445_p1 = pnand %p444_p0, %p438_p11 }
  0x21   :  { %448 = shalt.err (!%p445_p1)
}
  0x22   :  { %40 = dma.hbm_to_vmem [thread:$0]  %s562_s3, 1024, %s35_s8, [#allocation6], %s478_s28, %s478_s28, %s479_s29  }
  0x23   :  { %471 = dma.done.wait [#allocation3], 1024  }
  0x24   :  { %472 = vsyncadd [#allocation3], 4294966272 }
  0x25   :  { %473 = dma.done.wait [#allocation6], 1024  }
  0x26   :  { %474 = vsyncadd [#allocation6], 4294966272  ;;  %v481_v0 = vmov 0.0   ;;  %vm482_vm0 = vmmov 0   ;;  %v385_v1 = vld [vmem:[#allocation2] sm:$0xff]   ;;  %v386_v2 = vld [vmem:[#allocation2 + $0x8] sm:$0xff]  }
  0x27   :  { %338 = vmatprep.subr.bf16.mxu0 %v481_v0  ;;  %354 = vmatprep.mubr.msk.bf16.mxu0 %vm482_vm0, %v481_v0  ;;  %v387_v3 = vld [vmem:[#allocation2 + $0x10] sm:$0xff]   ;;  %v393_v4 = vld [vmem:[#allocation5] sm:$0xff]   ;;  %v388_v5 = vld [vmem:[#allocation2 + $0x18] sm:$0xff]  }
  0x28   :  { %358 = vmatprep.subr.bf16.mxu1 %v481_v0  ;;  %374 = vmatprep.mubr.msk.bf16.mxu1 %vm482_vm0, %v481_v0  ;;  %v394_v6 = vld [vmem:[#allocation5 + $0x8] sm:$0xff]   ;;  %v389_v7 = vld [vmem:[#allocation2 + $0x20] sm:$0xff]   ;;  %v395_v8 = vld [vmem:[#allocation5 + $0x10] sm:$0xff]  }
  0x29   :  { %339 = vmatpush3.bf16.msra.mxu0 %v385_v1  ;;  %359 = vmatpush3.bf16.msra.mxu1 %v393_v4  ;;  %v390_v9 = vld [vmem:[#allocation2 + $0x28] sm:$0xff]   ;;  %v396_v10 = vld [vmem:[#allocation5 + $0x18] sm:$0xff]   ;;  %v391_v11 = vld [vmem:[#allocation2 + $0x30] sm:$0xff]  }
  0x2a   :  { %340 = vmatprep.subr.bf16.mxu0 %v481_v0  ;;  %360 = vmatprep.subr.bf16.mxu1 %v481_v0  ;;  %v397_v12 = vld [vmem:[#allocation5 + $0x20] sm:$0xff]   ;;  %v392_v13 = vld [vmem:[#allocation2 + $0x38] sm:$0xff]   ;;  %v398_v14 = vld [vmem:[#allocation5 + $0x28] sm:$0xff]  }
  0x2b   :  { %v50_v15 = vld [vmem:[%s559_s0] sm:$0xf]  ;;  %v400_v17 = vld [vmem:[#allocation5 + $0x38] sm:$0xff]  }
  0x2c   :  { %v399_v16 = vld [vmem:[#allocation5 + $0x30] sm:$0xff]  }
  0x2d   :  { %341 = vmatpush3.bf16.msra.mxu0 %v386_v2  ;;  %361 = vmatpush3.bf16.msra.mxu1 %v394_v6  ;;  %v302_v18 = vld [vmem:[%s561_s2] ss:$0 sm:$0xff]  ;;  %s483_s2 = smov [#allocation7]  }
  0x2e   :  { %342 = vmatprep.subr.bf16.mxu0 %v481_v0  ;;  %362 = vmatprep.subr.bf16.mxu1 %v481_v0  ;;  %v311_v26 = vld [vmem:[%s563_s4] ss:$0 sm:$0xff]  ;;  %s292_s22 = sshll.u32 %s483_s2, 4  ;;  %s293_s22 = int_to_ptr.vmem [resolvable:$true] %s292_s22 }
  0x2f   :  { %s449_s4 = scalar_lea.vmem %s293_s22, 128  ;;  %p454_p3 = scmp.lt.s32.totalorder %s293_s22, %s293_s22 }
  0x30   :  { %p450_p2 = scmp.ne.s32.totalorder %s293_s22, %s449_s4  ;;  %p455_p4 = scmp.lt.s32.totalorder %s449_s4, %s449_s4 }
  0x31   :  { %343 = vmatpush3.bf16.msra.mxu0 %v387_v3  ;;  %363 = vmatpush3.bf16.msra.mxu1 %v395_v8 }
  0x32   :  { %344 = vmatprep.subr.bf16.mxu0 %v481_v0  ;;  %364 = vmatprep.subr.bf16.mxu1 %v481_v0  ;;  %p456_p5 = por %p455_p4, %p454_p3 }
  0x34   :  { %p457_p6 = pnand %p456_p5, %p450_p2 }
  0x35   :  { %345 = vmatpush3.bf16.msra.mxu0 %v388_v5  ;;  %365 = vmatpush3.bf16.msra.mxu1 %v396_v10 }
  0x36   :  { %346 = vmatprep.subr.bf16.mxu0 %v481_v0  ;;  %366 = vmatprep.subr.bf16.mxu1 %v481_v0 }
  0x39   :  { %347 = vmatpush3.bf16.msra.mxu0 %v389_v7  ;;  %367 = vmatpush3.bf16.msra.mxu1 %v397_v12 }
  0x3a   :  { %348 = vmatprep.subr.bf16.mxu0 %v481_v0  ;;  %368 = vmatprep.subr.bf16.mxu1 %v481_v0 }
  0x3d   :  { %349 = vmatpush3.bf16.msra.mxu0 %v390_v9  ;;  %369 = vmatpush3.bf16.msra.mxu1 %v398_v14 }
  0x3e   :  { %350 = vmatprep.subr.bf16.mxu0 %v481_v0  ;;  %370 = vmatprep.subr.bf16.mxu1 %v481_v0 }
  0x41   :  { %351 = vmatpush3.bf16.msra.mxu0 %v391_v11  ;;  %371 = vmatpush3.bf16.msra.mxu1 %v399_v16 }
  0x42   :  { %352 = vmatprep.subr.bf16.mxu0 %v481_v0  ;;  %372 = vmatprep.subr.bf16.mxu1 %v481_v0 }
  0x45   :  { %353 = vmatpush3.bf16.msra.mxu0 %v392_v13  ;;  %373 = vmatpush3.bf16.msra.mxu1 %v400_v17 }
  0x48   :  { %355 = vmatmul.mubr.bf16.vlgmr.msra.gmra.mrb[0].mxu0 %v50_v15 }
 0x11b   :  { %v156_v19 = vpop.f32.mrb[0].mxu0 }
 0x11c   :  { %v157_v20 = vadd.f32 %v302_v18, %v156_v19  ;;  %v356_v21 = vpop.f32.mrb[1].mxu0 }
 0x11d   :  { %v159_v22 = vpop.f32.mrb[2].mxu0 }
 0x11e   :  { %v162_v23 = vmax.f32 %v157_v20, 0.0  ;;  %v357_v24 = vpop.f32.mrb[3].mxu0 }
 0x120   :  { %v163_v25 = vpack.c.bf16 %v162_v23, %v162_v23 }
 0x122   :  { %375 = vmatmul.mubr.bf16.vlgmr.msra.gmra.mrb[0].mxu1 %v163_v25 }
 0x1f5   :  { %v269_v27 = vpop.f32.mrb[0].mxu1 }
 0x1f6   :  { %v270_v28 = vadd.f32 %v311_v26, %v269_v27  ;;  %v376_v29 = vpop.f32.mrb[1].mxu1 }
 0x1f7   :  { %v272_v30 = vpop.f32.mrb[2].mxu1 }
 0x1f8   :  { %275 = vmax.xlane.f32.xlu0 %v270_v28  ;;  %v377_v31 = vpop.f32.mrb[3].mxu1 }
 0x285   :  { %v276_v32 = vpop.xlane.xlu0 %275 }
 0x286   :  { %v277_v33 = vsub.f32 %v270_v28, %v276_v32 }
 0x288   :  { %v278_v34 = vmul.f32 1.442695, %v277_v33 }
 0x28a   :  { %401 = vpow2.f32 %v278_v34 }
 0x294   :  { %v402_v35 = vpop.eup %401 }
 0x295   :  { %280 = vadd.xlane.f32.xlu0 %v402_v35 }
 0x322   :  { %v281_v36 = vpop.xlane.xlu0 %280 }
 0x323   :  { %403 = vlog2.f32 %v281_v36 }
 0x32d   :  { %v404_v37 = vpop.eup %403 }
 0x32e   :  { %v283_v38 = vmul.f32 0.6931472, %v404_v37 }
 0x330   :  { %v284_v39 = vsub.f32 %v277_v33, %v283_v38 }
 0x332   :  { %285 = vst [vmem:[#allocation7] sm:$0xff] %v284_v39 }
 0x333   :  { %460 = shalt.err (!%p457_p6)
}
 0x334   :  { %s461_s25 = scalar_lea.hbm %s564_s5, 128 }
 0x335   :  { %p462_p7 = scmp.ne.s32.totalorder %s564_s5, %s461_s25  ;;  %p465_p8 = scmp.lt.u32.totalorder %s461_s25, %s564_s5 }
 0x337   :  { %p467_p9 = pnand %p465_p8, %p462_p7 }
 0x339   :  { %470 = shalt.err (!%p467_p9)
}
 0x33a   :  { %295 = dma.vmem_to_hbm [thread:$0]  %s293_s22, 128, %s564_s5, [#allocation4]  }
 0x33b   :  { %475 = dma.done.wait [#allocation4], 128  }
 0x33c   :  { %476 = vsyncadd [#allocation4], 4294967168 }
 0x33d   :  { %299 = vsyncpa [#allocation3], 1 }
 0x33e   :  { %300 = vsyncpa [#allocation6], 1 }
 0x33f   :  { %301 = vsyncpa [#allocation4], 1 }

</bundles_post_ra>
